<compile_context>
chip_gen: v5e
topology: v5e:2x2
jax: 0.10.0
libtpu: 0.0.40
codegen_flags: <defaults>
</compile_context>

<pallas_src>
import functools

import jax
import jax.numpy as jnp
from jax.experimental import pallas as pl
from jax.experimental.pallas import tpu as pltpu


# ------------------------------- Pallas kernel -------------------------------

def _asb_kernel(x0_ref, x1_ref, x2_ref, x3_ref, x4_ref,
                wfa_ref, wfb_ref, wba_ref, wbb_ref,
                out_ref, max_sc, sum_sc, *, hw_total):
    # x*_ref : (1, C, THW) spatial tile of each input (NC(HW) layout)
    # wfa/wfb: fusion FC weights (C, C//8) / (C//8, C)
    # wba    : concat of the 5 branch first-layer weights  (C, 5*hid)
    # wbb    : block-diagonal 5 branch second-layer weights (5*hid, 5*C)
    # out_ref: (1, 1, 5*C) -> [sigmoid(branch0) | ... | sigmoid(branch4)]
    t = pl.program_id(1)

    @pl.when(t == 0)
    def _():
        max_sc[...] = jnp.full_like(max_sc, -jnp.inf)
        sum_sc[...] = jnp.zeros_like(sum_sc)

    # Sum of the five inputs for this tile (stays in VMEM / vregs only).
    x = (x0_ref[...] + x1_ref[...] + x2_ref[...]
         + x3_ref[...] + x4_ref[...]).astype(jnp.float32)     # (1, C, THW)

    # Mask spatial positions past the true H*W extent (partial last tile).
    thw = x.shape[-1]
    pos = t * thw + jax.lax.broadcasted_iota(jnp.int32, x.shape, 2)
    valid = pos < hw_total
    x_max = jnp.where(valid, x, -jnp.inf)
    x_sum = jnp.where(valid, x, 0.0)

    max_sc[...] = jnp.maximum(max_sc[...], jnp.max(x_max, axis=2))
    sum_sc[...] = sum_sc[...] + jnp.sum(x_sum, axis=2)

    @pl.when(t == pl.num_programs(1) - 1)
    def _():
        # s = max_pool + avg_pool, shape (1, C)
        s = max_sc[...] + sum_sc[...] * (1.0 / hw_total)
        fusion = jnp.dot(
            jnp.maximum(
                jnp.dot(s, wfa_ref[...], preferred_element_type=jnp.float32),
                0.0),
            wfb_ref[...], preferred_element_type=jnp.float32)          # (1, C)
        h = jnp.maximum(
            jnp.dot(fusion, wba_ref[...], preferred_element_type=jnp.float32),
            0.0)                                                       # (1, 5*hid)
        logits = jnp.dot(h, wbb_ref[...],
                         preferred_element_type=jnp.float32)           # (1, 5*C)
        out_ref[...] = jax.nn.sigmoid(logits).reshape(out_ref.shape).astype(
            out_ref.dtype)


# ------------------------------- host wrapper --------------------------------

def asb_forward(x0, x1, x2, x3, x4, params):
    """Inputs x0..x4: (B, C, H, W).  Returns 5 gates of shape (B, C, 1, 1)."""
    B, C, H, W = x0.shape
    HW = H * W
    xs = [x.reshape(B, C, HW) for x in (x0, x1, x2, x3, x4)]

    # Spatial tile: full extent if small, otherwise a 2048-lane tile
    # (multiple of 128; keeps 5 double-buffered input tiles well under the
    # scoped VMEM limit on every TPU generation, incl. v7x).
    THW = HW if HW <= 2048 else 2048
    n_hw = pl.cdiv(HW, THW)

    hid = params["fc0_a"].shape[1]
    wfa, wfb = params["fc_a"], params["fc_b"]
    # Fuse the 5 branch FCs: first layers side-by-side, second layers
    # block-diagonal (tiny, built once at trace time).
    wba = jnp.concatenate([params[f"fc{i}_a"] for i in range(5)], axis=1)
    wbb = jnp.zeros((5 * hid, 5 * C), jnp.float32)
    for i in range(5):
        wbb = wbb.at[i * hid:(i + 1) * hid, i * C:(i + 1) * C].set(
            params[f"fc{i}_b"])

    x_spec = pl.BlockSpec((1, C, THW), lambda b, t: (b, 0, t))

    def w_spec(w):
        return pl.BlockSpec(w.shape, lambda b, t: (0, 0))

    out = pl.pallas_call(
        functools.partial(_asb_kernel, hw_total=HW),
        out_shape=jax.ShapeDtypeStruct((B, 1, 5 * C), x0.dtype),
        grid=(B, n_hw),
        in_specs=[x_spec] * 5 + [w_spec(wfa), w_spec(wfb),
                                 w_spec(wba), w_spec(wbb)],
        out_specs=pl.BlockSpec((1, 1, 5 * C), lambda b, t: (b, 0, 0)),
        scratch_shapes=[pltpu.VMEM((1, C), jnp.float32),   # running max
                        pltpu.VMEM((1, C), jnp.float32)],  # running sum
        compiler_params=pltpu.CompilerParams(
            dimension_semantics=("parallel", "arbitrary")),
    )(*xs, wfa, wfb, wba, wbb)

    gates = out.reshape(B, 5, C)
    return [gates[:, i, :].reshape(B, C, 1, 1) for i in range(5)]


# ------------------------------- parameters ----------------------------------

def init_params(key, in_planes):
    keys = iter(jax.random.split(key, 16))

    def w(cin, cout):
        return 0.2 * jax.random.normal(next(keys), (cin, cout), jnp.float32)

    P = {"fc_a": w(in_planes, in_planes // 8),
         "fc_b": w(in_planes // 8, in_planes)}
    for i in range(5):
        P[f"fc{i}_a"] = w(in_planes, in_planes // 16)
        P[f"fc{i}_b"] = w(in_planes // 16, in_planes)
    return P


# ----------------------------- pure-JAX reference ----------------------------

def ref_forward(x0, x1, x2, x3, x4, P):
    x = x0 + x1 + x2 + x3 + x4
    s = jnp.max(x, axis=(2, 3)) + jnp.mean(x, axis=(2, 3))
    fusion = jnp.maximum(s @ P["fc_a"], 0.0) @ P["fc_b"]
    outs = []
    for i in range(5):
        g = jax.nn.sigmoid(
            jnp.maximum(fusion @ P[f"fc{i}_a"], 0.0) @ P[f"fc{i}_b"])
        outs.append(g.reshape(g.shape[0], g.shape[1], 1, 1))
    return outs


if __name__ == "__main__":
    key = jax.random.PRNGKey(0)
    kp, *kxs = jax.random.split(key, 6)
    B, C, H, W = 2, 64, 16, 16            # in_planes must be divisible by 16
    xs = [jax.random.normal(k, (B, C, H, W), jnp.float32) for k in kxs]
    P = init_params(kp, C)

    outs = jax.jit(asb_forward)(*xs, P)
    outs = jax.block_until_ready(outs)
    assert all(o.shape == (B, C, 1, 1) for o in outs)

    refs = ref_forward(*xs, P)
    err = max(float(jnp.max(jnp.abs(o - r))) for o, r in zip(outs, refs))
    if err > 1e-3:
        raise AssertionError(f"mismatch vs reference: max abs err {err}")
    print("KERNEL_OK")
</pallas_src>

<mosaic_0001>
module attributes {stable_mosaic.version = 11 : i64} {
  func.func @_asb_kernel(%arg0: i32, %arg1: i32, %arg2: memref<1x64x256xf32, #tpu.memory_space<vmem>>, %arg3: memref<1x64x256xf32, #tpu.memory_space<vmem>>, %arg4: memref<1x64x256xf32, #tpu.memory_space<vmem>>, %arg5: memref<1x64x256xf32, #tpu.memory_space<vmem>>, %arg6: memref<1x64x256xf32, #tpu.memory_space<vmem>>, %arg7: memref<64x8xf32, #tpu.memory_space<vmem>>, %arg8: memref<8x64xf32, #tpu.memory_space<vmem>>, %arg9: memref<64x20xf32, #tpu.memory_space<vmem>>, %arg10: memref<20x320xf32, #tpu.memory_space<vmem>>, %arg11: memref<1x1x320xf32, #tpu.memory_space<vmem>>, %arg12: memref<1x64xf32, #tpu.memory_space<vmem>>, %arg13: memref<1x64xf32, #tpu.memory_space<vmem>>) attributes {dimension_semantics = [#tpu.dimension_semantics<parallel>, #tpu.dimension_semantics<arbitrary>], iteration_bounds = array<i64: 2, 1>, scalar_prefetch = 0 : i64, scratch_operands = 2 : i64, tpu.core_type = #tpu.core_type<tc>, window_params = [{transform_indices = @transform_0, window_bounds = array<i64: 1, 64, 256>}, {transform_indices = @transform_1, window_bounds = array<i64: 1, 64, 256>}, {transform_indices = @transform_2, window_bounds = array<i64: 1, 64, 256>}, {transform_indices = @transform_3, window_bounds = array<i64: 1, 64, 256>}, {transform_indices = @transform_4, window_bounds = array<i64: 1, 64, 256>}, {pipeline_mode = #tpu.pipeline_mode<synchronous>, transform_indices = @transform_5, window_bounds = array<i64: 64, 8>}, {pipeline_mode = #tpu.pipeline_mode<synchronous>, transform_indices = @transform_6, window_bounds = array<i64: 8, 64>}, {pipeline_mode = #tpu.pipeline_mode<synchronous>, transform_indices = @transform_7, window_bounds = array<i64: 64, 20>}, {pipeline_mode = #tpu.pipeline_mode<synchronous>, transform_indices = @transform_8, window_bounds = array<i64: 20, 320>}, {transform_indices = @transform_9, window_bounds = array<i64: 1, 1, 320>}]} {
    %c0_i32 = arith.constant 0 : i32
    %0 = arith.cmpi eq, %arg1, %c0_i32 : i32
    %1 = arith.extui %0 : i1 to i32
    %c0_i32_0 = arith.constant 0 : i32
    %2 = arith.cmpi ne, %1, %c0_i32_0 : i32
    scf.if %2 {
      %cst_29 = arith.constant 0xFF800000 : f32
      %33 = vector.broadcast %cst_29 : f32 to vector<1x64xf32>
      %c0_30 = arith.constant 0 : index
      %c0_31 = arith.constant 0 : index
      %34 = vector.load %arg12[%c0_30, %c0_31] : memref<1x64xf32, #tpu.memory_space<vmem>>, vector<1x64xf32>
      tpu.vector_store %arg12[%c0_30, %c0_31], %33 {strides = array<i32>} : memref<1x64xf32, #tpu.memory_space<vmem>>, vector<1x64xf32>,
      %cst_32 = arith.constant 0.000000e+00 : f32
      %35 = vector.broadcast %cst_32 : f32 to vector<1x64xf32>
      %c0_33 = arith.constant 0 : index
      %c0_34 = arith.constant 0 : index
      %36 = vector.load %arg13[%c0_33, %c0_34] : memref<1x64xf32, #tpu.memory_space<vmem>>, vector<1x64xf32>
      tpu.vector_store %arg13[%c0_33, %c0_34], %35 {strides = array<i32>} : memref<1x64xf32, #tpu.memory_space<vmem>>, vector<1x64xf32>,
    } else {
    }
    %c0 = arith.constant 0 : index
    %c0_1 = arith.constant 0 : index
    %c0_2 = arith.constant 0 : index
    %3 = vector.load %arg2[%c0, %c0_1, %c0_2] : memref<1x64x256xf32, #tpu.memory_space<vmem>>, vector<1x64x256xf32>
    %c0_3 = arith.constant 0 : index
    %c0_4 = arith.constant 0 : index
    %c0_5 = arith.constant 0 : index
    %4 = vector.load %arg3[%c0_3, %c0_4, %c0_5] : memref<1x64x256xf32, #tpu.memory_space<vmem>>, vector<1x64x256xf32>
    %5 = arith.addf %3, %4 : vector<1x64x256xf32>
    %c0_6 = arith.constant 0 : index
    %c0_7 = arith.constant 0 : index
    %c0_8 = arith.constant 0 : index
    %6 = vector.load %arg4[%c0_6, %c0_7, %c0_8] : memref<1x64x256xf32, #tpu.memory_space<vmem>>, vector<1x64x256xf32>
    %7 = arith.addf %5, %6 : vector<1x64x256xf32>
    %c0_9 = arith.constant 0 : index
    %c0_10 = arith.constant 0 : index
    %c0_11 = arith.constant 0 : index
    %8 = vector.load %arg5[%c0_9, %c0_10, %c0_11] : memref<1x64x256xf32, #tpu.memory_space<vmem>>, vector<1x64x256xf32>
    %9 = arith.addf %7, %8 : vector<1x64x256xf32>
    %c0_12 = arith.constant 0 : index
    %c0_13 = arith.constant 0 : index
    %c0_14 = arith.constant 0 : index
    %10 = vector.load %arg6[%c0_12, %c0_13, %c0_14] : memref<1x64x256xf32, #tpu.memory_space<vmem>>, vector<1x64x256xf32>
    %11 = arith.addf %9, %10 : vector<1x64x256xf32>
    %c256_i32 = arith.constant 256 : i32
    %12 = arith.muli %arg1, %c256_i32 : i32
    %13 = tpu.iota {dimensions = array<i32: 2>} : vector<1x64x256xi32>
    %14 = vector.broadcast %12 : i32 to vector<1x64x256xi32>
    %15 = arith.addi %14, %13 : vector<1x64x256xi32>
    %c256_i32_15 = arith.constant 256 : i32
    %16 = vector.broadcast %c256_i32_15 : i32 to vector<1x64x256xi32>
    %17 = arith.cmpi slt, %15, %16 : vector<1x64x256xi32>
    %cst = arith.constant 0xFF800000 : f32
    %18 = vector.broadcast %cst : f32 to vector<1x64x256xf32>
    %19 = arith.select %17, %11, %18 : vector<1x64x256xi1>, vector<1x64x256xf32>
    %cst_16 = arith.constant 0.000000e+00 : f32
    %20 = vector.broadcast %cst_16 : f32 to vector<1x64x256xf32>
    %21 = arith.select %17, %11, %20 : vector<1x64x256xi1>, vector<1x64x256xf32>
    %c0_17 = arith.constant 0 : index
    %c0_18 = arith.constant 0 : index
    %22 = vector.load %arg12[%c0_17, %c0_18] : memref<1x64xf32, #tpu.memory_space<vmem>>, vector<1x64xf32>
    %cst_19 = arith.constant dense<0xFF800000> : vector<1x64xf32>
    %23 = vector.multi_reduction <maximumf>, %19, %cst_19 [2] : vector<1x64x256xf32> to vector<1x64xf32>
    %24 = arith.maximumf %22, %23 : vector<1x64xf32>
    %c0_20 = arith.constant 0 : index
    %c0_21 = arith.constant 0 : index
    %25 = vector.load %arg12[%c0_20, %c0_21] : memref<1x64xf32, #tpu.memory_space<vmem>>, vector<1x64xf32>
    tpu.vector_store %arg12[%c0_20, %c0_21], %24 {strides = array<i32>} : memref<1x64xf32, #tpu.memory_space<vmem>>, vector<1x64xf32>,
    %c0_22 = arith.constant 0 : index
    %c0_23 = arith.constant 0 : index
    %26 = vector.load %arg13[%c0_22, %c0_23] : memref<1x64xf32, #tpu.memory_space<vmem>>, vector<1x64xf32>
    %cst_24 = arith.constant dense<0.000000e+00> : vector<1x64xf32>
    %27 = vector.multi_reduction <add>, %21, %cst_24 [2] : vector<1x64x256xf32> to vector<1x64xf32>
    %28 = arith.addf %26, %27 : vector<1x64xf32>
    %c0_25 = arith.constant 0 : index
    %c0_26 = arith.constant 0 : index
    %29 = vector.load %arg13[%c0_25, %c0_26] : memref<1x64xf32, #tpu.memory_space<vmem>>, vector<1x64xf32>
    tpu.vector_store %arg13[%c0_25, %c0_26], %28 {strides = array<i32>} : memref<1x64xf32, #tpu.memory_space<vmem>>, vector<1x64xf32>,
    %c0_i32_27 = arith.constant 0 : i32
    %30 = arith.cmpi eq, %arg1, %c0_i32_27 : i32
    %31 = arith.extui %30 : i1 to i32
    %c0_i32_28 = arith.constant 0 : i32
    %32 = arith.cmpi ne, %31, %c0_i32_28 : i32
    scf.if %32 {
      %c0_29 = arith.constant 0 : index
      %c0_30 = arith.constant 0 : index
      %33 = vector.load %arg12[%c0_29, %c0_30] : memref<1x64xf32, #tpu.memory_space<vmem>>, vector<1x64xf32>
      %c0_31 = arith.constant 0 : index
      %c0_32 = arith.constant 0 : index
      %34 = vector.load %arg13[%c0_31, %c0_32] : memref<1x64xf32, #tpu.memory_space<vmem>>, vector<1x64xf32>
      %cst_33 = arith.constant 3.906250e-03 : f32
      %35 = vector.broadcast %cst_33 : f32 to vector<1x64xf32>
      %36 = arith.mulf %34, %35 : vector<1x64xf32>
      %37 = arith.addf %33, %36 : vector<1x64xf32>
      %c0_34 = arith.constant 0 : index
      %c0_35 = arith.constant 0 : index
      %38 = vector.load %arg7[%c0_34, %c0_35] : memref<64x8xf32, #tpu.memory_space<vmem>>, vector<64x8xf32>
      %cst_36 = arith.constant dense<0.000000e+00> : vector<1x8xf32>
      %39 = tpu.matmul %37, %38, %cst_36 {dimension_numbers = #tpu.dot_dimension_numbers<[1], [0], [0], [1], [0, 0, 1, 1], [], []>} : vector<1x64xf32>, vector<64x8xf32>, vector<1x8xf32> -> vector<1x8xf32>
      %cst_37 = arith.constant 0.000000e+00 : f32
      %40 = vector.broadcast %cst_37 : f32 to vector<1x8xf32>
      %41 = arith.maximumf %39, %40 : vector<1x8xf32>
      %c0_38 = arith.constant 0 : index
      %c0_39 = arith.constant 0 : index
      %42 = vector.load %arg8[%c0_38, %c0_39] : memref<8x64xf32, #tpu.memory_space<vmem>>, vector<8x64xf32>
      %cst_40 = arith.constant dense<0.000000e+00> : vector<1x64xf32>
      %43 = tpu.matmul %41, %42, %cst_40 {dimension_numbers = #tpu.dot_dimension_numbers<[1], [0], [0], [1], [0, 0, 1, 1], [], []>} : vector<1x8xf32>, vector<8x64xf32>, vector<1x64xf32> -> vector<1x64xf32>
      %c0_41 = arith.constant 0 : index
      %c0_42 = arith.constant 0 : index
      %44 = vector.load %arg9[%c0_41, %c0_42] : memref<64x20xf32, #tpu.memory_space<vmem>>, vector<64x20xf32>
      %cst_43 = arith.constant dense<0.000000e+00> : vector<1x20xf32>
      %45 = tpu.matmul %43, %44, %cst_43 {dimension_numbers = #tpu.dot_dimension_numbers<[1], [0], [0], [1], [0, 0, 1, 1], [], []>} : vector<1x64xf32>, vector<64x20xf32>, vector<1x20xf32> -> vector<1x20xf32>
      %cst_44 = arith.constant 0.000000e+00 : f32
      %46 = vector.broadcast %cst_44 : f32 to vector<1x20xf32>
      %47 = arith.maximumf %45, %46 : vector<1x20xf32>
      %c0_45 = arith.constant 0 : index
      %c0_46 = arith.constant 0 : index
      %48 = vector.load %arg10[%c0_45, %c0_46] : memref<20x320xf32, #tpu.memory_space<vmem>>, vector<20x320xf32>
      %cst_47 = arith.constant dense<0.000000e+00> : vector<1x320xf32>
      %49 = tpu.matmul %47, %48, %cst_47 {dimension_numbers = #tpu.dot_dimension_numbers<[1], [0], [0], [1], [0, 0, 1, 1], [], []>} : vector<1x20xf32>, vector<20x320xf32>, vector<1x320xf32> -> vector<1x320xf32>
      %50 = arith.negf %49 : vector<1x320xf32>
      %51 = math.exp %50 : vector<1x320xf32>
      %cst_48 = arith.constant 1.000000e+00 : f32
      %52 = vector.broadcast %cst_48 : f32 to vector<1x320xf32>
      %53 = arith.addf %52, %51 : vector<1x320xf32>
      %54 = arith.divf %52, %53 : vector<1x320xf32>
      %55 = vector.shape_cast %54 : vector<1x320xf32> to vector<1x1x320xf32>
      %c0_49 = arith.constant 0 : index
      %c0_50 = arith.constant 0 : index
      %c0_51 = arith.constant 0 : index
      %56 = vector.load %arg11[%c0_49, %c0_50, %c0_51] : memref<1x1x320xf32, #tpu.memory_space<vmem>>, vector<1x1x320xf32>
      tpu.vector_store %arg11[%c0_49, %c0_50, %c0_51], %55 {strides = array<i32>} : memref<1x1x320xf32, #tpu.memory_space<vmem>>, vector<1x1x320xf32>,
    } else {
    }
    return
  }
  func.func @transform_0(%arg0: i32, %arg1: i32) -> (i32, i32, i32) {
    %c0_i32 = arith.constant 0 : i32
    %c0_i32_0 = arith.constant 0 : i32
    return %arg0, %c0_i32, %arg1 : i32, i32, i32
  }
  func.func @transform_1(%arg0: i32, %arg1: i32) -> (i32, i32, i32) {
    %c0_i32 = arith.constant 0 : i32
    %c0_i32_0 = arith.constant 0 : i32
    return %arg0, %c0_i32, %arg1 : i32, i32, i32
  }
  func.func @transform_2(%arg0: i32, %arg1: i32) -> (i32, i32, i32) {
    %c0_i32 = arith.constant 0 : i32
    %c0_i32_0 = arith.constant 0 : i32
    return %arg0, %c0_i32, %arg1 : i32, i32, i32
  }
  func.func @transform_3(%arg0: i32, %arg1: i32) -> (i32, i32, i32) {
    %c0_i32 = arith.constant 0 : i32
    %c0_i32_0 = arith.constant 0 : i32
    return %arg0, %c0_i32, %arg1 : i32, i32, i32
  }
  func.func @transform_4(%arg0: i32, %arg1: i32) -> (i32, i32, i32) {
    %c0_i32 = arith.constant 0 : i32
    %c0_i32_0 = arith.constant 0 : i32
    return %arg0, %c0_i32, %arg1 : i32, i32, i32
  }
  func.func @transform_5(%arg0: i32, %arg1: i32) -> (i32, i32) {
    %c0_i32 = arith.constant 0 : i32
    %c0_i32_0 = arith.constant 0 : i32
    %c0_i32_1 = arith.constant 0 : i32
    return %c0_i32, %c0_i32_0 : i32, i32
  }
  func.func @transform_6(%arg0: i32, %arg1: i32) -> (i32, i32) {
    %c0_i32 = arith.constant 0 : i32
    %c0_i32_0 = arith.constant 0 : i32
    %c0_i32_1 = arith.constant 0 : i32
    return %c0_i32, %c0_i32_0 : i32, i32
  }
  func.func @transform_7(%arg0: i32, %arg1: i32) -> (i32, i32) {
    %c0_i32 = arith.constant 0 : i32
    %c0_i32_0 = arith.constant 0 : i32
    %c0_i32_1 = arith.constant 0 : i32
    return %c0_i32, %c0_i32_0 : i32, i32
  }
  func.func @transform_8(%arg0: i32, %arg1: i32) -> (i32, i32) {
    %c0_i32 = arith.constant 0 : i32
    %c0_i32_0 = arith.constant 0 : i32
    %c0_i32_1 = arith.constant 0 : i32
    return %c0_i32, %c0_i32_0 : i32, i32
  }
  func.func @transform_9(%arg0: i32, %arg1: i32) -> (i32, i32, i32) {
    %c0_i32 = arith.constant 0 : i32
    %c0_i32_0 = arith.constant 0 : i32
    %c0_i32_1 = arith.constant 0 : i32
    return %arg0, %c0_i32, %c0_i32_0 : i32, i32, i32
  }
}

</mosaic_0001>

<bundles_post_ra>
// kernel: asb_forward.1
= control target key start
LH: loop header
LB: loop body
LE: loop exit
PB: predicated region body
PF: predicated region fallthrough
CT: control target
= control target key end

     0   :  { %s1691_s30 = smov 0   ;;  %s1693_s10 = smov 0   ;;  %s1989_s0 = inlined_call_operand.vmem [shape: f32[2,64,256], index: 0, kind: input, shape index: {}]   ;;  %s1990_s1 = inlined_call_operand.vmem [shape: f32[2,64,256], index: 1, kind: input, shape index: {}]   ;;  %s1991_s2 = inlined_call_operand.vmem [shape: f32[2,64,256], index: 2, kind: input, shape index: {}]   ;;  %s1992_s3 = inlined_call_operand.vmem [shape: f32[2,64,256], index: 3, kind: input, shape index: {}]   ;;  %s1993_s4 = inlined_call_operand.vmem [shape: f32[2,64,256], index: 4, kind: input, shape index: {}]   ;;  %s1994_s5 = inlined_call_operand.vmem [shape: f32[64,8], index: 5, kind: input, shape index: {}]   ;;  %s1995_s6 = inlined_call_operand.vmem [shape: f32[8,64], index: 6, kind: input, shape index: {}]   ;;  %s1996_s7 = inlined_call_operand.vmem [shape: f32[64,20], index: 7, kind: input, shape index: {}]   ;;  %s1997_s8 = inlined_call_operand.vmem [shape: f32[20,320], index: 8, kind: input, shape index: {}]   ;;  %s1998_s9 = inlined_call_operand.vmem [shape: f32[2,1,320], index: 9, kind: output, shape index: {}]  }
   0x1   :  { %s1695_s11 = smov 0  }
   0x2 LB: > { %s31_s12 = sadd.s32 1, %s1632_s10  ;;  %p1541_p0 = scmp.ge.s32.totalorder %s1636_s11, 1  ;;  %s1636_s11 = sphi %s1695_s11, %s19_s11   ;;  %s1632_s10 = sphi %s1693_s10, %s2000_s10   ;;  %s1628_s30 = sphi %s1691_s30, %s1999_s30  }
   0x3   : > { %p33_p1 = scmp.ge.s32.totalorder %s31_s12, 2  ;;  %p374_p2 = scmp.lt.s32.totalorder %s1636_s11, 3 }
   0x5   : > { %s2002_s12 = smov (%p33_p1, %s31_s12), 0  ;;  %p375_p3 = pnand %p1541_p0, %p374_p2 }
   0x6   : > { %p450_p4 = scmp.lt.s32.totalorder (!%p375_p3), %s1628_s30, 1 }
   0x7   : > { %378 = sbr.rel (%p375_p3) target bundleno = 1069 (0x42d), region = 56 }
   0xc   : > { %s2004_s30 = smov (!%p450_p4, %s1628_s30), 1  ;;  %vm507_vm0 = vcmask 516096   ;;  %vm898_vm1 = vcmask 130112   ;;  %vm902_vm2 = vcmask 195712   ;;  %vm906_vm3 = vcmask 261312  }
   0xd   : > { %s1566_s13 = sshll.u32 %s2004_s30, 7  ;;  %vm910_vm4 = vcmask 326912   ;;  %vm914_vm5 = vcmask 392512   ;;  %vm918_vm6 = vcmask 458112   ;;  %vm922_vm7 = vcmask 523712  }
   0xe   : > { %s1715_s16 = scalar_lea.vmem %s1989_s0, %s1566_s13  ;;  %s1720_s19 = scalar_lea.vmem %s1990_s1, %s1566_s13  ;;  %vm1161_vm8 = vcmask 523264   ;;  %vm1187_vm9 = vcmask 64512   ;;  %vm1256_vm10 = vcmask 1043456   ;;  %vm1252_vm11 = vcmask 162816  }
   0xf   : > { %s1725_s22 = scalar_lea.vmem %s1991_s2, %s1566_s13  ;;  %s1730_s25 = scalar_lea.vmem %s1992_s3, %s1566_s13  ;;  %v510_v0 = vld [vmem:[%s1715_s16] sm:$0xff]  ;;  %v511_v1 = vld [vmem:[%s1715_s16 + $0x8] sm:$0xff]  ;;  %v512_v12 = vld [vmem:[%s1715_s16 + $0x10] sm:$0xff] }
  0x10   : > { %v526_v2 = vld [vmem:[%s1720_s19] sm:$0xff]  ;;  %s1738_s28 = scalar_lea.vmem %s1993_s4, %s1566_s13  ;;  %v527_v3 = vld [vmem:[%s1720_s19 + $0x8] sm:$0xff]  ;;  %v513_v13 = vld [vmem:[%s1715_s16 + $0x18] sm:$0xff]  ;;  %s1571_s13 = smul.u32 3, %s2004_s30 }
  0x11   : > { %v542_v4 = vadd.f32 %v526_v2, %v510_v0  ;;  %v558_v5 = vld [vmem:[%s1725_s22] sm:$0xff]  ;;  %v559_v6 = vld [vmem:[%s1725_s22 + $0x8] sm:$0xff]  ;;  %v543_v7 = vadd.f32 %v527_v3, %v511_v1  ;;  %v528_v15 = vld [vmem:[%s1720_s19 + $0x10] sm:$0xff] }
  0x12   : > { %v590_v8 = vld [vmem:[%s1730_s25] sm:$0xff]  ;;  %v591_v9 = vld [vmem:[%s1730_s25 + $0x8] sm:$0xff]  ;;  %v529_v16 = vld [vmem:[%s1720_s19 + $0x18] sm:$0xff]  ;;  %v544_v20 = vadd.f32 %v528_v15, %v512_v12 }
  0x13   : > { %v574_v10 = vadd.f32 %v558_v5, %v542_v4  ;;  %v622_v11 = vld [vmem:[%s1738_s28] sm:$0xff]  ;;  %v575_v14 = vadd.f32 %v559_v6, %v543_v7  ;;  %v560_v17 = vld [vmem:[%s1725_s22 + $0x10] sm:$0xff]  ;;  %v623_v19 = vld [vmem:[%s1738_s28 + $0x8] sm:$0xff]  ;;  %v545_v21 = vadd.f32 %v529_v16, %v513_v13 }
  0x14   : > { %v561_v22 = vld [vmem:[%s1725_s22 + $0x18] sm:$0xff]  ;;  %v592_v23 = vld [vmem:[%s1730_s25 + $0x10] sm:$0xff]  ;;  %v514_v27 = vld [vmem:[%s1715_s16 + $0x20] sm:$0xff]  ;;  %v576_v29 = vadd.f32 %v560_v17, %v544_v20 }
  0x15   : > { %v606_v18 = vadd.f32 %v590_v8, %v574_v10  ;;  %v607_v24 = vadd.f32 %v591_v9, %v575_v14  ;;  %v593_v25 = vld [vmem:[%s1730_s25 + $0x18] sm:$0xff]  ;;  %v624_v26 = vld [vmem:[%s1738_s28 + $0x10] sm:$0xff]  ;;  %v577_v30 = vadd.f32 %v561_v22, %v545_v21  ;;  %v515_v32 = vld [vmem:[%s1715_s16 + $0x28] sm:$0xff] }
  0x16   : > { %v625_v31 = vld [vmem:[%s1738_s28 + $0x18] sm:$0xff]  ;;  %v530_v33 = vld [vmem:[%s1720_s19 + $0x20] sm:$0xff]  ;;  %v531_v34 = vld [vmem:[%s1720_s19 + $0x28] sm:$0xff]  ;;  %v608_v41 = vadd.f32 %v592_v23, %v576_v29 }
  0x17   : > { %v1757_v28 = vadd.f32 %v622_v11, %v606_v18  ;;  %v1763_v35 = vadd.f32 %v623_v19, %v607_v24  ;;  %v546_v36 = vadd.f32 %v530_v33, %v514_v27  ;;  %v547_v37 = vadd.f32 %v531_v34, %v515_v32  ;;  %v562_v38 = vld [vmem:[%s1725_s22 + $0x20] sm:$0xff]  ;;  %v563_v39 = vld [vmem:[%s1725_s22 + $0x28] sm:$0xff]  ;;  %v516_v49 = vld [vmem:[%s1715_s16 + $0x30] sm:$0xff] }
  0x18   : > { %v594_v40 = vld [vmem:[%s1730_s25 + $0x20] sm:$0xff]  ;;  %v609_v42 = vadd.f32 %v593_v25, %v577_v30  ;;  %v595_v43 = vld [vmem:[%s1730_s25 + $0x28] sm:$0xff]  ;;  %v517_v50 = vld [vmem:[%s1715_s16 + $0x38] sm:$0xff]  ;;  %v1776_v52 = vadd.f32 %v624_v26, %v608_v41 }
  0x19   : > { %v626_v44 = vld [vmem:[%s1738_s28 + $0x20] sm:$0xff]  ;;  %v627_v45 = vld [vmem:[%s1738_s28 + $0x28] sm:$0xff]  ;;  %v696_v46 = vmax.f32 %v1757_v28, %v1763_v35  ;;  %v578_v47 = vadd.f32 %v562_v38, %v546_v36  ;;  %v579_v48 = vadd.f32 %v563_v39, %v547_v37  ;;  %v532_v51 = vld [vmem:[%s1720_s19 + $0x30] sm:$0xff] }
  0x1a   : > { %v533_v53 = vld [vmem:[%s1720_s19 + $0x38] sm:$0xff]  ;;  %v548_v54 = vadd.f32 %v532_v51, %v516_v49  ;;  %v564_v55 = vld [vmem:[%s1725_s22 + $0x30] sm:$0xff]  ;;  %v1781_v57 = vadd.f32 %v625_v31, %v609_v42  ;;  %v518_v1 = vld [vmem:[%s1715_s16 + $0x40] sm:$0xff] }
  0x1b   : > { %v565_v56 = vld [vmem:[%s1725_s22 + $0x38] sm:$0xff]  ;;  %697 = vmax.xlane.f32.xlu0 %v696_v46  ;;  %v610_v58 = vadd.f32 %v594_v40, %v578_v47  ;;  %v611_v59 = vadd.f32 %v595_v43, %v579_v48  ;;  %v549_v60 = vadd.f32 %v533_v53, %v517_v50  ;;  %v596_v61 = vld [vmem:[%s1730_s25 + $0x30] sm:$0xff]  ;;  %v519_v2 = vld [vmem:[%s1715_s16 + $0x48] sm:$0xff] }
  0x1c   : > { %v597_v62 = vld [vmem:[%s1730_s25 + $0x38] sm:$0xff]  ;;  %v580_v63 = vadd.f32 %v564_v55, %v548_v54  ;;  %v628_v0 = vld [vmem:[%s1738_s28 + $0x30] sm:$0xff]  ;;  %v534_v6 = vld [vmem:[%s1720_s19 + $0x40] sm:$0xff]  ;;  %v699_v15 = vmax.f32 %v1776_v52, %v1781_v57 }
  0x1d   : > { %v1788_v3 = vadd.f32 %v626_v44, %v610_v58  ;;  %v1790_v4 = vadd.f32 %v627_v45, %v611_v59  ;;  %v581_v5 = vadd.f32 %v565_v56, %v549_v60  ;;  %v535_v7 = vld [vmem:[%s1720_s19 + $0x48] sm:$0xff]  ;;  %v566_v8 = vld [vmem:[%s1725_s22 + $0x40] sm:$0xff]  ;;  %v629_v10 = vld [vmem:[%s1738_s28 + $0x38] sm:$0xff]  ;;  %v550_v11 = vadd.f32 %v534_v6, %v518_v1 }
  0x1e   : > { %v612_v9 = vadd.f32 %v596_v61, %v580_v63  ;;  %v551_v12 = vadd.f32 %v535_v7, %v519_v2  ;;  %v567_v13 = vld [vmem:[%s1725_s22 + $0x48] sm:$0xff]  ;;  %v598_v14 = vld [vmem:[%s1730_s25 + $0x40] sm:$0xff]  ;;  %v520_v20 = vld [vmem:[%s1715_s16 + $0x50] sm:$0xff] }
  0x1f   : > { %v702_v16 = vmax.f32 %v1788_v3, %v1790_v4  ;;  %v613_v17 = vadd.f32 %v597_v62, %v581_v5  ;;  %v599_v18 = vld [vmem:[%s1730_s25 + $0x48] sm:$0xff]  ;;  %v630_v19 = vld [vmem:[%s1738_s28 + $0x40] sm:$0xff]  ;;  %v582_v21 = vadd.f32 %v566_v8, %v550_v11  ;;  %v521_v23 = vld [vmem:[%s1715_s16 + $0x58] sm:$0xff] }
  0x20   : > { %v583_v22 = vadd.f32 %v567_v13, %v551_v12  ;;  %v536_v24 = vld [vmem:[%s1720_s19 + $0x50] sm:$0xff]  ;;  %v537_v25 = vld [vmem:[%s1720_s19 + $0x58] sm:$0xff]  ;;  %v1808_v26 = vadd.f32 %v628_v0, %v612_v9  ;;  %v631_v29 = vld [vmem:[%s1738_s28 + $0x48] sm:$0xff] }
  0x21   : > { %703 = vmax.xlane.f32.xlu1 %v702_v16  ;;  %v1810_v27 = vadd.f32 %v629_v10, %v613_v17  ;;  %v552_v30 = vadd.f32 %v536_v24, %v520_v20  ;;  %v553_v31 = vadd.f32 %v537_v25, %v521_v23  ;;  %v568_v32 = vld [vmem:[%s1725_s22 + $0x50] sm:$0xff]  ;;  %v569_v33 = vld [vmem:[%s1725_s22 + $0x58] sm:$0xff]  ;;  %v614_v34 = vadd.f32 %v598_v14, %v582_v21  ;;  %v522_v42 = vld [vmem:[%s1715_s16 + $0x60] sm:$0xff] }
  0x22   : > { %v615_v36 = vadd.f32 %v599_v18, %v583_v22  ;;  %v600_v37 = vld [vmem:[%s1730_s25 + $0x50] sm:$0xff]  ;;  %v601_v38 = vld [vmem:[%s1730_s25 + $0x58] sm:$0xff]  ;;  %v523_v43 = vld [vmem:[%s1715_s16 + $0x68] sm:$0xff] }
  0x23   : > { %v632_v39 = vld [vmem:[%s1738_s28 + $0x50] sm:$0xff]  ;;  %700 = vmax.xlane.f32.xlu0 %v699_v15  ;;  %v584_v40 = vadd.f32 %v568_v32, %v552_v30  ;;  %v585_v41 = vadd.f32 %v569_v33, %v553_v31  ;;  %v538_v44 = vld [vmem:[%s1720_s19 + $0x60] sm:$0xff]  ;;  %v646_v45 = vadd.f32 %v630_v19, %v614_v34  ;;  %v539_v47 = vld [vmem:[%s1720_s19 + $0x68] sm:$0xff]  ;;  %v705_v51 = vmax.f32 %v1808_v26, %v1810_v27 }
  0x24   : > { %v647_v46 = vadd.f32 %v631_v29, %v615_v36  ;;  %v554_v48 = vadd.f32 %v538_v44, %v522_v42  ;;  %v570_v49 = vld [vmem:[%s1725_s22 + $0x60] sm:$0xff]  ;;  %v571_v50 = vld [vmem:[%s1725_s22 + $0x68] sm:$0xff]  ;;  %v633_v55 = vld [vmem:[%s1738_s28 + $0x58] sm:$0xff]  ;;  %v555_v56 = vadd.f32 %v539_v47, %v523_v43  ;;  %v932_v33 = vadd.f32 %v1781_v57, %v1776_v52 }
  0x25   : > { %v616_v53 = vadd.f32 %v600_v37, %v584_v40  ;;  %v617_v54 = vadd.f32 %v601_v38, %v585_v41  ;;  %v602_v58 = vld [vmem:[%s1730_s25 + $0x60] sm:$0xff]  ;;  %v603_v59 = vld [vmem:[%s1730_s25 + $0x68] sm:$0xff]  ;;  %v524_v63 = vld [vmem:[%s1715_s16 + $0x70] sm:$0xff]  ;;  %v929_v34 = vadd.f32 %v1763_v35, %v1757_v28  ;;  %v935_v36 = vadd.f32 %v1790_v4, %v1788_v3 }
  0x26   : > { %v708_v60 = vmax.f32 %v646_v45, %v647_v46  ;;  %v586_v61 = vadd.f32 %v570_v49, %v554_v48  ;;  %v634_v62 = vld [vmem:[%s1738_s28 + $0x60] sm:$0xff]  ;;  %v525_v0 = vld [vmem:[%s1715_s16 + $0x78] sm:$0xff]  ;;  %v587_v2 = vadd.f32 %v571_v50, %v555_v56  ;;  %v540_v5 = vld [vmem:[%s1720_s19 + $0x70] sm:$0xff]  ;;  %v941_v37 = vadd.f32 %v647_v46, %v646_v45  ;;  %s502_s16 = scalar_lea.vmem %s1998_s9, %s1571_s13 }
  0x27   : > { %v648_v1 = vadd.f32 %v632_v39, %v616_v53  ;;  %v541_v6 = vld [vmem:[%s1720_s19 + $0x78] sm:$0xff]  ;;  %v572_v7 = vld [vmem:[%s1725_s22 + $0x70] sm:$0xff]  ;;  %v649_v8 = vadd.f32 %v633_v55, %v617_v54  ;;  %v635_v10 = vld [vmem:[%s1738_s28 + $0x68] sm:$0xff]  ;;  %v556_v11 = vadd.f32 %v540_v5, %v524_v63  ;;  %v938_v38 = vadd.f32 %v1810_v27, %v1808_v26 }
  0x28   : > { %709 = vmax.xlane.f32.xlu2 %v708_v60  ;;  %v618_v9 = vadd.f32 %v602_v58, %v586_v61  ;;  %v557_v12 = vadd.f32 %v541_v6, %v525_v0  ;;  %v573_v13 = vld [vmem:[%s1725_s22 + $0x78] sm:$0xff]  ;;  %v619_v14 = vadd.f32 %v603_v59, %v587_v2  ;;  %v604_v15 = vld [vmem:[%s1730_s25 + $0x70] sm:$0xff]  ;;  %v1638_v57 = vmov 0  }
  0x29   : > { %706 = vmax.xlane.f32.xlu1 %v705_v51  ;;  %v605_v16 = vld [vmem:[%s1730_s25 + $0x78] sm:$0xff]  ;;  %v588_v18 = vadd.f32 %v572_v7, %v556_v11  ;;  %v636_v21 = vld [vmem:[%s1738_s28 + $0x70] sm:$0xff]  ;;  %v711_v23 = vmax.f32 %v648_v1, %v649_v8  ;;  %v944_v39 = vadd.f32 %v649_v8, %v648_v1  ;;  %1599 = vset.pattern.permute.xlu2 %v1638_v57 }
  0x2a   : > { %v650_v17 = vadd.f32 %v634_v62, %v618_v9  ;;  %v589_v19 = vadd.f32 %v573_v13, %v557_v12  ;;  %v651_v20 = vadd.f32 %v635_v10, %v619_v14  ;;  %v637_v22 = vld [vmem:[%s1738_s28 + $0x78] sm:$0xff]  ;;  %1600 = vset.pattern.permute.xlu1 %v1638_v57  ;;  %1601 = vset.pattern.permute.xlu0 %v1638_v57 }
  0x2b   : > { %v620_v24 = vadd.f32 %v604_v15, %v588_v18 }
  0x2c   : > { %v621_v25 = vadd.f32 %v605_v16, %v589_v19  ;;  %v714_v29 = vmax.f32 %v650_v17, %v651_v20  ;;  %v947_v40 = vadd.f32 %v651_v20, %v650_v17 }
  0x2d   : > { %v652_v30 = vadd.f32 %v636_v21, %v620_v24 }
  0x2e   : > { %v653_v31 = vadd.f32 %v637_v22, %v621_v25  ;;  %715 = vmax.xlane.f32.xlu0 %v714_v29 }
  0x30   : > { %712 = vmax.xlane.f32.xlu2 %v711_v23  ;;  %v717_v32 = vmax.f32 %v652_v30, %v653_v31  ;;  %v950_v52 = vadd.f32 %v653_v31, %v652_v30 }
  0x32   : > { %718 = vmax.xlane.f32.xlu1 %v717_v32 }
  0x36   : > { %933 = vadd.xlane.f32.xlu0 %v932_v33 }
  0x38   : > { %930 = vadd.xlane.f32.xlu2 %v929_v34 }
  0x3a   : > { %936 = vadd.xlane.f32.xlu1 %v935_v36 }
  0x3e   : > { %942 = vadd.xlane.f32.xlu0 %v941_v37 }
  0x40   : > { %939 = vadd.xlane.f32.xlu2 %v938_v38 }
  0x42   : > { %945 = vadd.xlane.f32.xlu1 %v944_v39 }
  0x46   : > { %951 = vadd.xlane.f32.xlu0 %v950_v52 }
  0x48   : > { %948 = vadd.xlane.f32.xlu2 %v947_v40 }
  0x8e   : > { %v698_v28 = vpop.xlane.xlu0 %697 }
  0x8f   : > { %v728_v35 = vperm.slane %v698_v28, 0  ;;  %v729_v3 = vperm.slane %v698_v28, 1  ;;  %v730_v4 = vperm.slane %v698_v28, 2  ;;  %v731_v41 = vperm.slane %v698_v28, 3 }
  0x90   : > { %v732_v42 = vperm.slane %v698_v28, 4  ;;  %v733_v26 = vperm.slane %v698_v28, 5  ;;  %v734_v27 = vperm.slane %v698_v28, 6  ;;  %v735_v43 = vperm.slane %v698_v28, 7 }
  0x91   : > { %792 = vst [vmem:[#allocation1] ss:$9 sm:$0xff] %v728_v35 }
  0x92   : > { %794 = vst [vmem:[#allocation1 + $0x1] ss:$9 sm:$0xff] %v729_v3 }
  0x93   : > { %796 = vst [vmem:[#allocation1 + $0x2] ss:$9 sm:$0xff] %v730_v4 }
  0x94   : > { %798 = vst [vmem:[#allocation1 + $0x3] ss:$9 sm:$0xff] %v731_v41  ;;  %v704_v55 = vpop.xlane.xlu1 %703 }
  0x95   : > { %800 = vst [vmem:[#allocation1 + $0x4] ss:$9 sm:$0xff] %v732_v42  ;;  %v744_v56 = vperm.slane %v704_v55, 0  ;;  %v745_v58 = vperm.slane %v704_v55, 1  ;;  %v746_v59 = vperm.slane %v704_v55, 2  ;;  %v747_v61 = vperm.slane %v704_v55, 3 }
  0x96   : > { %802 = vst [vmem:[#allocation1 + $0x5] ss:$9 sm:$0xff] %v733_v26  ;;  %v701_v44 = vpop.xlane.xlu0 %700  ;;  %v748_v62 = vperm.slane %v704_v55, 4  ;;  %v749_v63 = vperm.slane %v704_v55, 5  ;;  %v750_v0 = vperm.slane %v704_v55, 6  ;;  %v751_v1 = vperm.slane %v704_v55, 7 }
  0x97   : > { %804 = vst [vmem:[#allocation1 + $0x6] ss:$9 sm:$0xff] %v734_v27  ;;  %v736_v45 = vperm.slane %v701_v44, 0  ;;  %v737_v46 = vperm.slane %v701_v44, 1  ;;  %v738_v47 = vperm.slane %v701_v44, 2  ;;  %v739_v49 = vperm.slane %v701_v44, 3 }
  0x98   : > { %806 = vst [vmem:[#allocation1 + $0x7] ss:$9 sm:$0xff] %v735_v43  ;;  %v740_v50 = vperm.slane %v701_v44, 4  ;;  %v741_v51 = vperm.slane %v701_v44, 5  ;;  %v742_v53 = vperm.slane %v701_v44, 6  ;;  %v743_v54 = vperm.slane %v701_v44, 7 }
  0x9b   : > { %v710_v14 = vpop.xlane.xlu2 %709 }
  0x9c   : > { %v707_v2 = vpop.xlane.xlu1 %706  ;;  %v760_v15 = vperm.slane %v710_v14, 0  ;;  %v761_v16 = vperm.slane %v710_v14, 1  ;;  %v762_v17 = vperm.slane %v710_v14, 2  ;;  %v763_v19 = vperm.slane %v710_v14, 3 }
  0x9d   : > { %v752_v5 = vperm.slane %v707_v2, 0  ;;  %v753_v6 = vperm.slane %v707_v2, 1  ;;  %v754_v7 = vperm.slane %v707_v2, 2  ;;  %v755_v9 = vperm.slane %v707_v2, 3 }
  0x9e   : > { %v756_v10 = vperm.slane %v707_v2, 4  ;;  %v757_v11 = vperm.slane %v707_v2, 5  ;;  %v758_v12 = vperm.slane %v707_v2, 6  ;;  %v759_v13 = vperm.slane %v707_v2, 7 }
  0x9f   : > { %v807_v48 = vld [vmem:[#allocation1] sm:$0xff]  ;;  %v764_v20 = vperm.slane %v710_v14, 4  ;;  %v765_v21 = vperm.slane %v710_v14, 5  ;;  %v766_v22 = vperm.slane %v710_v14, 6  ;;  %v767_v23 = vperm.slane %v710_v14, 7 }
  0xa0   : > { %808 = vst [vmem:[#allocation1] ss:$9 sm:$0xff] %v736_v45  ;;  %872 = vperm.xlu2 %1599, %v807_v48  }
  0xa1   : > { %809 = vst [vmem:[#allocation1 + $0x1] ss:$9 sm:$0xff] %v737_v46  ;;  %v716_v38 = vpop.xlane.xlu0 %715 }
  0xa2   : > { %810 = vst [vmem:[#allocation1 + $0x2] ss:$9 sm:$0xff] %v738_v47  ;;  %v776_v39 = vperm.slane %v716_v38, 0  ;;  %v777_v40 = vperm.slane %v716_v38, 1  ;;  %v778_v52 = vperm.slane %v716_v38, 2  ;;  %v779_v28 = vperm.slane %v716_v38, 3 }
  0xa3   : > { %811 = vst [vmem:[#allocation1 + $0x3] ss:$9 sm:$0xff] %v739_v49  ;;  %v713_v24 = vpop.xlane.xlu2 %712  ;;  %v780_v35 = vperm.slane %v716_v38, 4  ;;  %v781_v3 = vperm.slane %v716_v38, 5  ;;  %v782_v4 = vperm.slane %v716_v38, 6  ;;  %v783_v41 = vperm.slane %v716_v38, 7 }
  0xa4   : > { %812 = vst [vmem:[#allocation1 + $0x4] ss:$9 sm:$0xff] %v740_v50  ;;  %v768_v25 = vperm.slane %v713_v24, 0  ;;  %v769_v29 = vperm.slane %v713_v24, 1  ;;  %v770_v30 = vperm.slane %v713_v24, 2  ;;  %v771_v32 = vperm.slane %v713_v24, 3 }
  0xa5   : > { %813 = vst [vmem:[#allocation1 + $0x5] ss:$9 sm:$0xff] %v741_v51  ;;  %v772_v33 = vperm.slane %v713_v24, 4  ;;  %v773_v34 = vperm.slane %v713_v24, 5  ;;  %v774_v36 = vperm.slane %v713_v24, 6  ;;  %v775_v37 = vperm.slane %v713_v24, 7  ;;  %v719_v42 = vpop.xlane.xlu1 %718 }
  0xa6   : > { %814 = vst [vmem:[#allocation1 + $0x6] ss:$9 sm:$0xff] %v742_v53  ;;  %v784_v26 = vperm.slane %v719_v42, 0  ;;  %v785_v27 = vperm.slane %v719_v42, 1  ;;  %v786_v43 = vperm.slane %v719_v42, 2  ;;  %v787_v45 = vperm.slane %v719_v42, 3 }
  0xa7   : > { %815 = vst [vmem:[#allocation1 + $0x7] ss:$9 sm:$0xff] %v743_v54  ;;  %v788_v46 = vperm.slane %v719_v42, 4  ;;  %v789_v47 = vperm.slane %v719_v42, 5  ;;  %v790_v48 = vperm.slane %v719_v42, 6  ;;  %v791_v49 = vperm.slane %v719_v42, 7 }
  0xab   : > { %v931_v50 = vpop.xlane.xlu2 %930 }
  0xac   : > { %v961_v51 = vperm.slane %v931_v50, 0  ;;  %v962_v53 = vperm.slane %v931_v50, 1  ;;  %v963_v54 = vperm.slane %v931_v50, 2 }
  0xae   : > { %v816_v60 = vld [vmem:[#allocation1] sm:$0xff] }
  0xaf   : > { %817 = vst [vmem:[#allocation1] ss:$9 sm:$0xff] %v744_v56  ;;  %875 = vperm.xlu1 %1600, %v816_v60   ;;  %v964_v56 = vperm.slane %v931_v50, 3  ;;  %v967_v60 = vperm.slane %v931_v50, 6 }
  0xb0   : > { %818 = vst [vmem:[#allocation1 + $0x1] ss:$9 sm:$0xff] %v745_v58  ;;  %v965_v58 = vperm.slane %v931_v50, 4 }
  0xb1   : > { %819 = vst [vmem:[#allocation1 + $0x2] ss:$9 sm:$0xff] %v746_v59  ;;  %v966_v59 = vperm.slane %v931_v50, 5 }
  0xb2   : > { %820 = vst [vmem:[#allocation1 + $0x3] ss:$9 sm:$0xff] %v747_v61  ;;  %v968_v61 = vperm.slane %v931_v50, 7 }
  0xb3   : > { %821 = vst [vmem:[#allocation1 + $0x4] ss:$9 sm:$0xff] %v748_v62  ;;  %v934_v62 = vpop.xlane.xlu0 %933 }
  0xb4   : > { %822 = vst [vmem:[#allocation1 + $0x5] ss:$9 sm:$0xff] %v749_v63  ;;  %v969_v63 = vperm.slane %v934_v62, 0 }
  0xb5   : > { %823 = vst [vmem:[#allocation1 + $0x6] ss:$9 sm:$0xff] %v750_v0  ;;  %v970_v0 = vperm.slane %v934_v62, 1 }
  0xb6   : > { %824 = vst [vmem:[#allocation1 + $0x7] ss:$9 sm:$0xff] %v751_v1  ;;  %v971_v1 = vperm.slane %v934_v62, 2 }
  0xbd   : > { %v825_v8 = vld [vmem:[#allocation1] sm:$0xff] }
  0xbe   : > { %826 = vst [vmem:[#allocation1] ss:$9 sm:$0xff] %v752_v5  ;;  %878 = vperm.xlu1 %1600, %v825_v8   ;;  %v972_v5 = vperm.slane %v934_v62, 3  ;;  %v975_v8 = vperm.slane %v934_v62, 6 }
  0xbf   : > { %827 = vst [vmem:[#allocation1 + $0x1] ss:$9 sm:$0xff] %v753_v6  ;;  %v973_v6 = vperm.slane %v934_v62, 4 }
  0xc0   : > { %828 = vst [vmem:[#allocation1 + $0x2] ss:$9 sm:$0xff] %v754_v7  ;;  %v974_v7 = vperm.slane %v934_v62, 5 }
  0xc1   : > { %829 = vst [vmem:[#allocation1 + $0x3] ss:$9 sm:$0xff] %v755_v9  ;;  %v976_v9 = vperm.slane %v934_v62, 7 }
  0xc2   : > { %830 = vst [vmem:[#allocation1 + $0x4] ss:$9 sm:$0xff] %v756_v10  ;;  %v937_v10 = vpop.xlane.xlu1 %936 }
  0xc3   : > { %831 = vst [vmem:[#allocation1 + $0x5] ss:$9 sm:$0xff] %v757_v11  ;;  %v977_v11 = vperm.slane %v937_v10, 0 }
  0xc4   : > { %832 = vst [vmem:[#allocation1 + $0x6] ss:$9 sm:$0xff] %v758_v12  ;;  %v978_v12 = vperm.slane %v937_v10, 1 }
  0xc5   : > { %833 = vst [vmem:[#allocation1 + $0x7] ss:$9 sm:$0xff] %v759_v13  ;;  %v979_v13 = vperm.slane %v937_v10, 2 }
  0xcc   : > { %v834_v18 = vld [vmem:[#allocation1] sm:$0xff] }
  0xcd   : > { %835 = vst [vmem:[#allocation1] ss:$9 sm:$0xff] %v760_v15  ;;  %881 = vperm.xlu1 %1600, %v834_v18   ;;  %v980_v15 = vperm.slane %v937_v10, 3  ;;  %v983_v18 = vperm.slane %v937_v10, 6 }
  0xce   : > { %836 = vst [vmem:[#allocation1 + $0x1] ss:$9 sm:$0xff] %v761_v16  ;;  %v981_v16 = vperm.slane %v937_v10, 4 }
  0xcf   : > { %837 = vst [vmem:[#allocation1 + $0x2] ss:$9 sm:$0xff] %v762_v17  ;;  %v982_v17 = vperm.slane %v937_v10, 5 }
  0xd0   : > { %838 = vst [vmem:[#allocation1 + $0x3] ss:$9 sm:$0xff] %v763_v19  ;;  %v984_v19 = vperm.slane %v937_v10, 7  ;;  %v1639_v10 = vmov 0.0  }
  0xd1   : > { %839 = vst [vmem:[#allocation1 + $0x4] ss:$9 sm:$0xff] %v764_v20  ;;  %v940_v20 = vpop.xlane.xlu2 %939 }
  0xd2   : > { %840 = vst [vmem:[#allocation1 + $0x5] ss:$9 sm:$0xff] %v765_v21  ;;  %v985_v21 = vperm.slane %v940_v20, 0 }
  0xd3   : > { %841 = vst [vmem:[#allocation1 + $0x6] ss:$9 sm:$0xff] %v766_v22  ;;  %v986_v22 = vperm.slane %v940_v20, 1 }
  0xd4   : > { %842 = vst [vmem:[#allocation1 + $0x7] ss:$9 sm:$0xff] %v767_v23  ;;  %v987_v23 = vperm.slane %v940_v20, 2 }
  0xd5   : > { %509 = vst.msk [vmem:[#allocation3] sm:$0x1] %vm507_vm0, %v1639_v10 }
  0xdb   : > { %v843_v31 = vld [vmem:[#allocation1] sm:$0xff] }
  0xdc   : > { %844 = vst [vmem:[#allocation1] ss:$9 sm:$0xff] %v768_v25  ;;  %884 = vperm.xlu2 %1599, %v843_v31   ;;  %v988_v25 = vperm.slane %v940_v20, 3  ;;  %v991_v31 = vperm.slane %v940_v20, 6 }
  0xdd   : > { %845 = vst [vmem:[#allocation1 + $0x1] ss:$9 sm:$0xff] %v769_v29  ;;  %v989_v29 = vperm.slane %v940_v20, 4 }
  0xde   : > { %846 = vst [vmem:[#allocation1 + $0x2] ss:$9 sm:$0xff] %v770_v30  ;;  %v990_v30 = vperm.slane %v940_v20, 5 }
  0xdf   : > { %847 = vst [vmem:[#allocation1 + $0x3] ss:$9 sm:$0xff] %v771_v32  ;;  %v992_v32 = vperm.slane %v940_v20, 7  ;;  %v1158_v20 = vld [vmem:[%s1994_s5 + $0x28] sm:$0xff] }
  0xe0   : > { %848 = vst [vmem:[#allocation1 + $0x4] ss:$9 sm:$0xff] %v772_v33  ;;  %v943_v33 = vpop.xlane.xlu0 %942 }
  0xe1   : > { %849 = vst [vmem:[#allocation1 + $0x5] ss:$9 sm:$0xff] %v773_v34  ;;  %v993_v34 = vperm.slane %v943_v33, 0 }
  0xe2   : > { %850 = vst [vmem:[#allocation1 + $0x6] ss:$9 sm:$0xff] %v774_v36  ;;  %v994_v36 = vperm.slane %v943_v33, 1 }
  0xe3   : > { %851 = vst [vmem:[#allocation1 + $0x7] ss:$9 sm:$0xff] %v775_v37  ;;  %v995_v37 = vperm.slane %v943_v33, 2 }
  0xea   : > { %v852_v57 = vld [vmem:[#allocation1] sm:$0xff] }
  0xeb   : > { %853 = vst [vmem:[#allocation1] ss:$9 sm:$0xff] %v776_v39  ;;  %887 = vperm.xlu0 %1601, %v852_v57   ;;  %v996_v39 = vperm.slane %v943_v33, 3  ;;  %v999_v57 = vperm.slane %v943_v33, 6 }
  0xec   : > { %854 = vst [vmem:[#allocation1 + $0x1] ss:$9 sm:$0xff] %v777_v40  ;;  %v997_v40 = vperm.slane %v943_v33, 4 }
  0xed   : > { %855 = vst [vmem:[#allocation1 + $0x2] ss:$9 sm:$0xff] %v778_v52  ;;  %v998_v52 = vperm.slane %v943_v33, 5 }
  0xee   : > { %856 = vst [vmem:[#allocation1 + $0x3] ss:$9 sm:$0xff] %v779_v28  ;;  %v1000_v28 = vperm.slane %v943_v33, 7 }
  0xef   : > { %857 = vst [vmem:[#allocation1 + $0x4] ss:$9 sm:$0xff] %v780_v35  ;;  %v946_v35 = vpop.xlane.xlu1 %945 }
  0xf0   : > { %858 = vst [vmem:[#allocation1 + $0x5] ss:$9 sm:$0xff] %v781_v3  ;;  %v1001_v3 = vperm.slane %v946_v35, 0 }
  0xf1   : > { %859 = vst [vmem:[#allocation1 + $0x6] ss:$9 sm:$0xff] %v782_v4  ;;  %v1002_v4 = vperm.slane %v946_v35, 1 }
  0xf2   : > { %860 = vst [vmem:[#allocation1 + $0x7] ss:$9 sm:$0xff] %v783_v41  ;;  %v1003_v41 = vperm.slane %v946_v35, 2 }
  0xf9   : > { %v1849_v44 = vld [vmem:[#allocation1] sm:$0xff] }
  0xfa   : > { %862 = vst [vmem:[#allocation1] ss:$9 sm:$0xff] %v784_v26  ;;  %v1004_v26 = vperm.slane %v946_v35, 3 }
  0xfb   : > { %863 = vst [vmem:[#allocation1 + $0x1] ss:$9 sm:$0xff] %v785_v27  ;;  %v1005_v27 = vperm.slane %v946_v35, 4 }
  0xfc   : > { %864 = vst [vmem:[#allocation1 + $0x2] ss:$9 sm:$0xff] %v786_v43  ;;  %v1006_v43 = vperm.slane %v946_v35, 5 }
  0xfd   : > { %865 = vst [vmem:[#allocation1 + $0x3] ss:$9 sm:$0xff] %v787_v45  ;;  %v1007_v45 = vperm.slane %v946_v35, 6 }
  0xfe   : > { %866 = vst [vmem:[#allocation1 + $0x4] ss:$9 sm:$0xff] %v788_v46  ;;  %v1008_v46 = vperm.slane %v946_v35, 7 }
  0xff   : > { %867 = vst [vmem:[#allocation1 + $0x5] ss:$9 sm:$0xff] %v789_v47  ;;  %v949_v47 = vpop.xlane.xlu2 %948 }
 0x100   : > { %868 = vst [vmem:[#allocation1 + $0x6] ss:$9 sm:$0xff] %v790_v48  ;;  %v1009_v48 = vperm.slane %v949_v47, 0  ;;  %v1011_v50 = vperm.slane %v949_v47, 2 }
 0x101   : > { %869 = vst [vmem:[#allocation1 + $0x7] ss:$9 sm:$0xff] %v791_v49  ;;  %v1010_v49 = vperm.slane %v949_v47, 1 }
 0x108   : > { %v1851_v55 = vld [vmem:[#allocation1] sm:$0xff] }
 0x109   : > { %1025 = vst [vmem:[#allocation1] ss:$9 sm:$0xff] %v961_v51  ;;  %v1012_v51 = vperm.slane %v949_v47, 3 }
 0x10a   : > { %1027 = vst [vmem:[#allocation1 + $0x1] ss:$9 sm:$0xff] %v962_v53 }
 0x10b   : > { %1029 = vst [vmem:[#allocation1 + $0x2] ss:$9 sm:$0xff] %v963_v54  ;;  %v1013_v54 = vperm.slane %v949_v47, 4 }
 0x10c   : > { %1031 = vst [vmem:[#allocation1 + $0x3] ss:$9 sm:$0xff] %v964_v56  ;;  %v1014_v56 = vperm.slane %v949_v47, 5 }
 0x10d   : > { %1033 = vst [vmem:[#allocation1 + $0x4] ss:$9 sm:$0xff] %v965_v58  ;;  %v1015_v58 = vperm.slane %v949_v47, 6 }
 0x10e   : > { %1035 = vst [vmem:[#allocation1 + $0x5] ss:$9 sm:$0xff] %v966_v59  ;;  %v1016_v59 = vperm.slane %v949_v47, 7 }
 0x10f   : > { %1037 = vst [vmem:[#allocation1 + $0x6] ss:$9 sm:$0xff] %v967_v60  ;;  %v952_v60 = vpop.xlane.xlu0 %951 }
 0x110   : > { %1039 = vst [vmem:[#allocation1 + $0x7] ss:$9 sm:$0xff] %v968_v61  ;;  %v1017_v61 = vperm.slane %v952_v60, 0  ;;  %v1018_v62 = vperm.slane %v952_v60, 1 }
 0x117   : > { %v1040_v2 = vld [vmem:[#allocation1] sm:$0xff] }
 0x118   : > { %1041 = vst [vmem:[#allocation1] ss:$9 sm:$0xff] %v969_v63  ;;  %1105 = vperm.xlu1 %1600, %v1040_v2   ;;  %v1019_v63 = vperm.slane %v952_v60, 2  ;;  %v1021_v2 = vperm.slane %v952_v60, 4 }
 0x119   : > { %1042 = vst [vmem:[#allocation1 + $0x1] ss:$9 sm:$0xff] %v970_v0  ;;  %v1020_v0 = vperm.slane %v952_v60, 3 }
 0x11a   : > { %1043 = vst [vmem:[#allocation1 + $0x2] ss:$9 sm:$0xff] %v971_v1 }
 0x11b   : > { %1044 = vst [vmem:[#allocation1 + $0x3] ss:$9 sm:$0xff] %v972_v5  ;;  %v1022_v5 = vperm.slane %v952_v60, 5 }
 0x11c   : > { %1045 = vst [vmem:[#allocation1 + $0x4] ss:$9 sm:$0xff] %v973_v6  ;;  %v1023_v6 = vperm.slane %v952_v60, 6 }
 0x11d   : > { %1046 = vst [vmem:[#allocation1 + $0x5] ss:$9 sm:$0xff] %v974_v7  ;;  %v1024_v7 = vperm.slane %v952_v60, 7 }
 0x11e   : > { %1047 = vst [vmem:[#allocation1 + $0x6] ss:$9 sm:$0xff] %v975_v8  ;;  %v1855_v8 = vpop.permute.xlu2 %872 }
 0x11f   : > { %1048 = vst [vmem:[#allocation1 + $0x7] ss:$9 sm:$0xff] %v976_v9 }
 0x121   : > { %v1857_v9 = vpop.permute.xlu1 %875 }
 0x126   : > { %v1049_v14 = vld [vmem:[#allocation1] sm:$0xff] }
 0x127   : > { %1050 = vst [vmem:[#allocation1] ss:$9 sm:$0xff] %v977_v11  ;;  %1108 = vperm.xlu2 %1599, %v1049_v14   ;;  %v1640_v14 = vmov -inf  }
 0x128   : > { %1051 = vst [vmem:[#allocation1 + $0x1] ss:$9 sm:$0xff] %v978_v12 }
 0x129   : > { %1052 = vst [vmem:[#allocation1 + $0x2] ss:$9 sm:$0xff] %v979_v13 }
 0x12a   : > { %1053 = vst [vmem:[#allocation1 + $0x3] ss:$9 sm:$0xff] %v980_v15 }
 0x12b   : > { %1054 = vst [vmem:[#allocation1 + $0x4] ss:$9 sm:$0xff] %v981_v16 }
 0x12c   : > { %1055 = vst [vmem:[#allocation1 + $0x5] ss:$9 sm:$0xff] %v982_v17  ;;  %v655_v17 = vlaneseq }
 0x12d   : > { %1056 = vst [vmem:[#allocation1 + $0x6] ss:$9 sm:$0xff] %v983_v18  ;;  %v1160_v18 = vld [vmem:[%s1994_s5 + $0x38] sm:$0xff] }
 0x12e   : > { %1057 = vst [vmem:[#allocation1 + $0x7] ss:$9 sm:$0xff] %v984_v19  ;;  %v1159_v19 = vld [vmem:[%s1994_s5 + $0x30] sm:$0xff]  ;;  %1173 = vmatpush.msra.mxu0 %v1160_v18  ;;  %v1218_v18 = vld [vmem:[%s1996_s7 + $0x38] sm:$0xff] }
 0x12f   : > { %508 = vst.msk [vmem:[#allocation2] sm:$0x1] %vm507_vm0, %v1640_v14  ;;  %1230 = vmatpush.msra.mxu2 %v1218_v18 }
 0x130   : > { %v1862_v12 = vpop.permute.xlu1 %878  ;;  %1174 = vmatpush.msra.mxu0 %v1159_v19  ;;  %v1217_v19 = vld [vmem:[%s1996_s7 + $0x30] sm:$0xff] }
 0x131   : > { %1231 = vmatpush.msra.mxu2 %v1217_v19 }
 0x132   : > { %1175 = vmatpush.msra.mxu0 %v1158_v20  ;;  %v1216_v20 = vld [vmem:[%s1996_s7 + $0x28] sm:$0xff] }
 0x133   : > { %1232 = vmatpush.msra.mxu2 %v1216_v20 }
 0x135   : > { %v1058_v24 = vld [vmem:[#allocation1] sm:$0xff] }
 0x136   : > { %1059 = vst [vmem:[#allocation1] ss:$9 sm:$0xff] %v985_v21  ;;  %1111 = vperm.xlu0 %1601, %v1058_v24   ;;  %v1860_v11 = vpop.permute.xlu2 %884  ;;  %v656_v21 = vand.u32 127, %v655_v17  ;;  %v1157_v24 = vld [vmem:[%s1994_s5 + $0x20] sm:$0xff] }
 0x137   : > { %1060 = vst [vmem:[#allocation1 + $0x1] ss:$9 sm:$0xff] %v986_v22  ;;  %1176 = vmatpush.msra.mxu0 %v1157_v24  ;;  %v1212_v24 = vld [vmem:[%s1996_s7 + $0x8] sm:$0xff] }
 0x138   : > { %1061 = vst [vmem:[#allocation1 + $0x2] ss:$9 sm:$0xff] %v987_v23 }
 0x139   : > { %1062 = vst [vmem:[#allocation1 + $0x3] ss:$9 sm:$0xff] %v988_v25  ;;  %v900_v25 = vadd.s32 4294967280, %v656_v21 }
 0x13a   : > { %1063 = vst [vmem:[#allocation1 + $0x4] ss:$9 sm:$0xff] %v989_v29  ;;  %v1156_v29 = vld [vmem:[%s1994_s5 + $0x18] sm:$0xff] }
 0x13b   : > { %1064 = vst [vmem:[#allocation1 + $0x5] ss:$9 sm:$0xff] %v990_v30  ;;  %v896_v30 = vadd.s32 4294967288, %v656_v21  ;;  %1177 = vmatpush.msra.mxu0 %v1156_v29  ;;  %v901_v47 = vperm.slane %v1862_v12, %v900_v25 }
 0x13c   : > { %1065 = vst [vmem:[#allocation1 + $0x6] ss:$9 sm:$0xff] %v991_v31 }
 0x13d   : > { %1066 = vst [vmem:[#allocation1 + $0x7] ss:$9 sm:$0xff] %v992_v32 }
 0x13f   : > { %v1865_v15 = vpop.permute.xlu1 %881 }
 0x144   : > { %v1067_v38 = vld [vmem:[#allocation1] sm:$0xff] }
 0x145   : > { %1068 = vst [vmem:[#allocation1] ss:$9 sm:$0xff] %v993_v34  ;;  %1114 = vperm.xlu2 %1599, %v1067_v38   ;;  %v1155_v34 = vld [vmem:[%s1994_s5 + $0x10] sm:$0xff]  ;;  %v904_v38 = vadd.s32 4294967272, %v656_v21 }
 0x146   : > { %1069 = vst [vmem:[#allocation1 + $0x1] ss:$9 sm:$0xff] %v994_v36  ;;  %1178 = vmatpush.msra.mxu0 %v1155_v34  ;;  %v1246_v34 = vld [vmem:[%s1997_s8 + $0x18] sm:$0xff] }
 0x147   : > { %1070 = vst [vmem:[#allocation1 + $0x2] ss:$9 sm:$0xff] %v995_v37  ;;  %v1154_v37 = vld [vmem:[%s1994_s5 + $0x8] sm:$0xff] }
 0x148   : > { %1071 = vst [vmem:[#allocation1 + $0x3] ss:$9 sm:$0xff] %v996_v39  ;;  %1179 = vmatpush.msra.mxu0 %v1154_v37  ;;  %v1243_v37 = vld [vmem:[%s1997_s8] sm:$0xff] }
 0x149   : > { %1072 = vst [vmem:[#allocation1 + $0x4] ss:$9 sm:$0xff] %v997_v40 }
 0x14a   : > { %1073 = vst [vmem:[#allocation1 + $0x5] ss:$9 sm:$0xff] %v998_v52 }
 0x14b   : > { %1074 = vst [vmem:[#allocation1 + $0x6] ss:$9 sm:$0xff] %v999_v57  ;;  %v1153_v57 = vld [vmem:[%s1994_s5] sm:$0xff] }
 0x14c   : > { %1075 = vst [vmem:[#allocation1 + $0x7] ss:$9 sm:$0xff] %v1000_v28  ;;  %v912_v28 = vadd.s32 4294967256, %v656_v21  ;;  %1180 = vmatpush.msra.mxu0 %v1153_v57 }
 0x153   : > { %v1076_v42 = vld [vmem:[#allocation1] sm:$0xff] }
 0x154   : > { %1077 = vst [vmem:[#allocation1] ss:$9 sm:$0xff] %v1001_v3  ;;  %1117 = vperm.xlu2 %1599, %v1076_v42   ;;  %v908_v3 = vadd.s32 4294967264, %v656_v21  ;;  %v920_v42 = vadd.s32 4294967240, %v656_v21 }
 0x155   : > { %1078 = vst [vmem:[#allocation1 + $0x1] ss:$9 sm:$0xff] %v1002_v4  ;;  %v916_v4 = vadd.s32 4294967248, %v656_v21 }
 0x156   : > { %1079 = vst [vmem:[#allocation1 + $0x2] ss:$9 sm:$0xff] %v1003_v41 }
 0x157   : > { %1080 = vst [vmem:[#allocation1 + $0x3] ss:$9 sm:$0xff] %v1004_v26 }
 0x158   : > { %1081 = vst [vmem:[#allocation1 + $0x4] ss:$9 sm:$0xff] %v1005_v27 }
 0x159   : > { %1082 = vst [vmem:[#allocation1 + $0x5] ss:$9 sm:$0xff] %v1006_v43 }
 0x15a   : > { %1083 = vst [vmem:[#allocation1 + $0x6] ss:$9 sm:$0xff] %v1007_v45  ;;  %v897_v45 = vperm.slane %v1857_v9, %v896_v30  ;;  %v695_v9 = vld [vmem:[#allocation2] sm:$0x1] }
 0x15b   : > { %1084 = vst [vmem:[#allocation1 + $0x7] ss:$9 sm:$0xff] %v1008_v46 }
 0x162   : > { %v1085_v53 = vld [vmem:[#allocation1] sm:$0xff] }
 0x163   : > { %1120 = vperm.xlu0 %1601, %v1085_v53   ;;  %1086 = vst [vmem:[#allocation1] ss:$9 sm:$0xff] %v1009_v48 }
 0x164   : > { %1087 = vst [vmem:[#allocation1 + $0x1] ss:$9 sm:$0xff] %v1010_v49 }
 0x165   : > { %1088 = vst [vmem:[#allocation1 + $0x2] ss:$9 sm:$0xff] %v1011_v50  ;;  %v895_v50 = vperm.slane %v1855_v8, %v656_v21 }
 0x166   : > { %1089 = vst [vmem:[#allocation1 + $0x3] ss:$9 sm:$0xff] %v1012_v51  ;;  %v905_v51 = vperm.slane %v1865_v15, %v904_v38 }
 0x167   : > { %1090 = vst [vmem:[#allocation1 + $0x4] ss:$9 sm:$0xff] %v1013_v54 }
 0x168   : > { %1091 = vst [vmem:[#allocation1 + $0x5] ss:$9 sm:$0xff] %v1014_v56  ;;  %v928_v56 = vld [vmem:[#allocation3] sm:$0x1] }
 0x169   : > { %1092 = vst [vmem:[#allocation1 + $0x6] ss:$9 sm:$0xff] %v1015_v58 }
 0x16a   : > { %1093 = vst [vmem:[#allocation1 + $0x7] ss:$9 sm:$0xff] %v1016_v59  ;;  %v899_v59 = vsel %vm898_vm1, %v897_v45, %v895_v50 }
 0x16b   : > { %893 = vperm.xlu0 %1601, %v1851_v55  }
 0x171   : > { %v1094_v1 = vld [vmem:[#allocation1] sm:$0xff] }
 0x172   : > { %1123 = vperm.xlu1 %1600, %v1094_v1   ;;  %1095 = vst [vmem:[#allocation1] ss:$9 sm:$0xff] %v1017_v61  ;;  %v903_v61 = vsel %vm902_vm2, %v901_v47, %v899_v59  ;;  %v909_v1 = vperm.slane %v1860_v11, %v908_v3 }
 0x173   : > { %1096 = vst [vmem:[#allocation1 + $0x1] ss:$9 sm:$0xff] %v1018_v62 }
 0x174   : > { %1097 = vst [vmem:[#allocation1 + $0x2] ss:$9 sm:$0xff] %v1019_v63  ;;  %v907_v63 = vsel %vm906_vm3, %v905_v51, %v903_v61 }
 0x175   : > { %1098 = vst [vmem:[#allocation1 + $0x3] ss:$9 sm:$0xff] %v1020_v0 }
 0x176   : > { %1099 = vst [vmem:[#allocation1 + $0x4] ss:$9 sm:$0xff] %v1021_v2 }
 0x177   : > { %1100 = vst [vmem:[#allocation1 + $0x5] ss:$9 sm:$0xff] %v1022_v5 }
 0x178   : > { %1101 = vst [vmem:[#allocation1 + $0x6] ss:$9 sm:$0xff] %v1023_v6  ;;  %v911_v6 = vsel %vm910_vm4, %v909_v1, %v907_v63 }
 0x179   : > { %1102 = vst [vmem:[#allocation1 + $0x7] ss:$9 sm:$0xff] %v1024_v7 }
 0x17a   : > { %890 = vperm.xlu1 %1600, %v1849_v44   ;;  %v1867_v44 = vpop.permute.xlu0 %887 }
 0x17b   : > { %v913_v0 = vperm.slane %v1867_v44, %v912_v28 }
 0x180   : > { %v1103_v55 = vld [vmem:[#allocation1] sm:$0xff] }
 0x181   : > { %1126 = vperm.xlu2 %1599, %v1103_v55   ;;  %v1109_v13 = vpop.permute.xlu2 %1108  ;;  %v915_v55 = vsel %vm914_vm5, %v913_v0, %v911_v6 }
 0x182   : > { %v1129_v36 = vperm.slane %v1109_v13, %v896_v30  ;;  %v1211_v30 = vld [vmem:[%s1996_s7] sm:$0xff] }
 0x18a   : > { %v1106_v22 = vpop.permute.xlu1 %1105 }
 0x18b   : > { %v1128_v31 = vperm.slane %v1106_v22, %v656_v21  ;;  %v1215_v21 = vld [vmem:[%s1996_s7 + $0x20] sm:$0xff]  ;;  %v1214_v22 = vld [vmem:[%s1996_s7 + $0x18] sm:$0xff] }
 0x18c   : > { %1233 = vmatpush.msra.mxu2 %v1215_v21 }
 0x18d   : > { %v1130_v39 = vsel %vm898_vm1, %v1129_v36, %v1128_v31  ;;  %v1249_v31 = vld [vmem:[%s1997_s8 + $0x30] sm:$0xf]  ;;  %v1247_v36 = vld [vmem:[%s1997_s8 + $0x20] sm:$0xff] }
 0x18e   : > { %1234 = vmatpush.msra.mxu2 %v1214_v22  ;;  %1555 = vmatpush.msk.msra.mxu3 %vm1256_vm10, %v1249_v31 }
 0x190   : > { %1280 = vmatpush.msra.mxu3 %v1246_v34 }
 0x192   : > { %1281 = vmatpush.msra.mxu3 %v1243_v37 }
 0x19f   : > { %v1115_v16 = vpop.permute.xlu2 %1114 }
 0x1a0   : > { %v1133_v35 = vperm.slane %v1115_v16, %v904_v38  ;;  %v1186_v16 = vld [vmem:[%s1995_s6] sm:$0xff]  ;;  %v1244_v38 = vld [vmem:[%s1997_s8 + $0x8] sm:$0xff] }
 0x1a1   : > { %1206 = vmatpush.msra.mxu1 %v1186_v16 }
 0x1a8   : > { %v1112_v23 = vpop.permute.xlu0 %1111 }
 0x1a9   : > { %v1131_v33 = vperm.slane %v1112_v23, %v900_v25  ;;  %v1213_v23 = vld [vmem:[%s1996_s7 + $0x10] sm:$0xff] }
 0x1aa   : > { %1235 = vmatpush.msra.mxu2 %v1213_v23 }
 0x1ab   : > { %v1132_v40 = vsel %vm902_vm2, %v1131_v33, %v1130_v39  ;;  %v1251_v39 = vld [vmem:[%s1997_s8 + $0x40] sm:$0xf] }
 0x1ac   : > { %v1134_v41 = vsel %vm906_vm3, %v1133_v35, %v1132_v40  ;;  %1236 = vmatpush.msra.mxu2 %v1212_v24  ;;  %v1248_v40 = vld [vmem:[%s1997_s8 + $0x28] sm:$0xff]  ;;  %1559 = vmatpush.msk.msrb.mxu3 %vm1256_vm10, %v1251_v39 }
 0x1ae   : > { %v1118_v32 = vpop.permute.xlu2 %1117  ;;  %1237 = vmatpush.msra.mxu2 %v1211_v30  ;;  %1320 = vmatpush.msrb.mxu3 %v1248_v40 }
 0x1af   : > { %v1135_v27 = vperm.slane %v1118_v32, %v908_v3  ;;  %v1250_v32 = vld [vmem:[%s1997_s8 + $0x38] sm:$0xf] }
 0x1b0   : > { %1557 = vmatpush.msk.msrb.mxu1 %vm1256_vm10, %v1250_v32  ;;  %vm1395_vm10 = vcmp.lt.s32.totalorder %v655_v17, 320 }
 0x1b1   : > { %v1136_v48 = vsel %vm910_vm4, %v1135_v27, %v1134_v41 }
 0x1b2   : > { %1300 = vmatpush.msrb.mxu1 %v1247_v36 }
 0x1b4   : > { %1301 = vmatpush.msrb.mxu1 %v1244_v38 }
 0x1d5   : > { %v1121_v52 = vpop.permute.xlu0 %1120 }
 0x1d6   : > { %v1137_v26 = vperm.slane %v1121_v52, %v912_v28  ;;  %v1245_v52 = vld [vmem:[%s1997_s8 + $0x10] sm:$0xff] }
 0x1d7   : > { %1321 = vmatpush.msrb.mxu3 %v1245_v52 }
 0x1d8   : > { %v1138_v54 = vsel %vm914_vm5, %v1137_v26, %v1136_v48 }
 0x1db   : > { %v1127_v43 = vpop.permute.xlu2 %1126 }
 0x1dc   : > { %v1141_v53 = vperm.slane %v1127_v43, %v920_v42 }
 0x1dd   : > { %v894_v2 = vpop.permute.xlu0 %893 }
 0x1de   : > { %v921_v8 = vperm.slane %v894_v2, %v920_v42 }
 0x1e4   : > { %v1124_v46 = vpop.permute.xlu1 %1123 }
 0x1e5   : > { %v1139_v49 = vperm.slane %v1124_v46, %v916_v4 }
 0x1e7   : > { %v1140_v58 = vsel %vm918_vm6, %v1139_v49, %v1138_v54 }
 0x1e8   : > { %v1142_v60 = vsel %vm922_vm7, %v1141_v53, %v1140_v58 }
 0x1e9   : > { %v1144_v62 = vadd.f32 %v1142_v60, %v928_v56 }
 0x1eb   : > { %1145 = vst.msk [vmem:[#allocation3] sm:$0x1] %vm507_vm0, %v1144_v62 }
 0x1ec   : > { %v891_v5 = vpop.permute.xlu1 %890 }
 0x1ed   : > { %v917_v7 = vperm.slane %v891_v5, %v916_v4 }
 0x1ef   : > { %v919_v10 = vsel %vm918_vm6, %v917_v7, %v915_v55 }
 0x1f0   : > { %v923_v12 = vsel %vm922_vm7, %v921_v8, %v919_v10  ;;  %vm1388_vm7 = vcmask 1040384  }
 0x1f1   : > { %v925_v13 = vmax.f32 %v695_v9, %v923_v12 }
 0x1f2   : > { %v1150_v14 = vld [vmem:[#allocation3] sm:$0x1] }
 0x1f3   : > { %927 = vst.msk [vmem:[#allocation2] sm:$0x1] %vm507_vm0, %v925_v13  ;;  %v1151_v11 = vmul.f32 0.00390625, %v1150_v14 }
 0x1fa   : > { %v1149_v15 = vld [vmem:[#allocation2] sm:$0x1] }
 0x1fb   : > { %v1152_v44 = vadd.f32 %v1151_v11, %v1149_v15 }
 0x1fd   : > { %1552 = vmatmul.msk.f32.vlgmr.msra.gmra.mxu0 %vm1161_vm8, %v1152_v44 }
 0x27a   : > { %v1182_v25 = vpop.f32.mrf.mxu0 }
 0x27b   : > { %v1185_v29 = vmax.f32 %v1182_v25, 0.0 }
 0x27d   : > { %1553 = vmatmul.msk.f32.vlgmr.msra.gmra.mxu1 %vm1187_vm9, %v1185_v29  ;;  %vm1390_vm9 = vcmask 1041408  }
 0x2fa   : > { %v1208_v33 = vpop.f32.mrf.mxu1 }
 0x2fb   : > { %1554 = vmatmul.msk.f32.vlgmr.msra.gmra.mxu2 %vm1161_vm8, %v1208_v33 }
 0x37e   : > { %v1239_v57 = vpop.f32.mrf.mxu2 }
 0x37f   : > { %v1242_v28 = vmax.f32 %v1239_v57, 0.0 }
 0x381   : > { %1556 = vmatmul.msk.f32.vlgmr.msra.gmra.mxu3 %vm1252_vm11, %v1242_v28  ;;  %1558 = vmatmul.msk.f32.vlgmr.msrb.gmra.mxu1 %vm1252_vm11, %v1242_v28 }
 0x389   : > { %1560 = vmatmul.msk.f32.vlgmr.msrb.gmra.mxu3 %vm1252_vm11, %v1242_v28 }
 0x3fe   : > { %v1303_v35 = vpop.f32.mrf.mxu1 }
 0x3ff   : > { %v1562_v3 = vmul.f32 -1.442695, %v1303_v35 }
 0x401   : > { %1602 = vpow2.f32 %v1562_v3 }
 0x404   : > { %v1283_v4 = vpop.f32.mrf.mxu3 }
 0x405   : > { %v1561_v41 = vmul.f32 -1.442695, %v1283_v4 }
 0x407   : > { %v1603_v42 = vpop.eup %1602  ;;  %1604 = vpow2.f32 %v1561_v41 }
 0x408   : > { %v1336_v26 = vadd.f32 1.0, %v1603_v42 }
 0x40a   : > { %1606 = vrcp.f32 %v1336_v26  ;;  %v1364_v62 = vand.u32 2147483648, %v1336_v26  ;;  %vm1358_vm13 = vweird.f32 %v1336_v26  ;;  %v1362_v0 = vand.u32 2147483647, %v1336_v26 }
 0x40c   : > { %v1323_v27 = vpop.f32.mrf.mxu3  ;;  %v1365_v8 = vor.u32 1.1754944e-38, %v1364_v62  ;;  %vm1363_vm3 = vcmp.eq.f32.partialorder %v1362_v0, 8.507059e+37 }
 0x40d   : > { %v1605_v43 = vpop.eup %1604  ;;  %v1563_v45 = vmul.f32 -1.442695, %v1323_v27 }
 0x40e   : > { %v1335_v46 = vadd.f32 1.0, %v1605_v43 }
 0x40f   : > { %1608 = vpow2.f32 %v1563_v45 }
 0x410   : > { %v1607_v47 = vpop.eup %1606  ;;  %1610 = vrcp.f32 %v1335_v46  ;;  %v1349_v2 = vand.u32 2147483648, %v1335_v46  ;;  %vm1343_vm0 = vweird.f32 %v1335_v46  ;;  %v1347_v7 = vand.u32 2147483647, %v1335_v46 }
 0x411   : > { %v1354_v48 = vmul.f32 %v1607_v47, %v1336_v26  ;;  %vm1359_vm12 = vweird.f32 %v1607_v47 }
 0x412   : > { %vm1360_vm15 = vmor %vm1358_vm13, %vm1359_vm12  ;;  %v1350_v14 = vor.u32 1.1754944e-38, %v1349_v2  ;;  %vm1348_vm5 = vcmp.eq.f32.partialorder %v1347_v7, 8.507059e+37 }
 0x413   : > { %v1355_v51 = vsub.f32 1.0, %v1354_v48 }
 0x415   : > { %v1609_v49 = vpop.eup %1608  ;;  %v1356_v58 = vmul.f32 %v1607_v47, %v1355_v51 }
 0x416   : > { %v1611_v50 = vpop.eup %1610  ;;  %v1337_v53 = vadd.f32 1.0, %v1609_v49 }
 0x417   : > { %v1339_v54 = vmul.f32 %v1611_v50, %v1335_v46  ;;  %v1357_v61 = vadd.f32 %v1607_v47, %v1356_v58  ;;  %vm1344_vm14 = vweird.f32 %v1611_v50 }
 0x418   : > { %1612 = vrcp.f32 %v1337_v53  ;;  %v1379_v55 = vand.u32 2147483648, %v1337_v53  ;;  %vm1345_vm1 = vmor %vm1343_vm0, %vm1344_vm14  ;;  %v1377_v10 = vand.u32 2147483647, %v1337_v53  ;;  %vm1373_vm4 = vweird.f32 %v1337_v53 }
 0x419   : > { %v1340_v56 = vsub.f32 1.0, %v1339_v54  ;;  %v1361_v6 = vsel %vm1360_vm15, %v1607_v47, %v1357_v61 }
 0x41a   : > { %v1366_v13 = vsel %vm1363_vm3, %v1365_v8, %v1361_v6  ;;  %v1380_v15 = vor.u32 1.1754944e-38, %v1379_v55  ;;  %vm1378_vm8 = vcmp.eq.f32.partialorder %v1377_v10, 8.507059e+37 }
 0x41b   : > { %v1341_v59 = vmul.f32 %v1611_v50, %v1340_v56  ;;  %v1386_v18 = vrot.slane %v1366_v13, 7 }
 0x41d   : > { %v1342_v1 = vadd.f32 %v1611_v50, %v1341_v59 }
 0x41e   : > { %v1613_v60 = vpop.eup %1612 }
 0x41f   : > { %v1369_v63 = vmul.f32 %v1613_v60, %v1337_v53  ;;  %vm1374_vm2 = vweird.f32 %v1613_v60  ;;  %v1346_v12 = vsel %vm1345_vm1, %v1611_v50, %v1342_v1 }
 0x420   : > { %vm1375_vm6 = vmor %vm1373_vm4, %vm1374_vm2  ;;  %v1351_v44 = vsel %vm1348_vm5, %v1350_v14, %v1346_v12 }
 0x421   : > { %v1370_v5 = vsub.f32 1.0, %v1369_v63  ;;  %v1389_v21 = vsel %vm1388_vm7, %v1351_v44, %v1386_v18 }
 0x423   : > { %v1371_v9 = vmul.f32 %v1613_v60, %v1370_v5 }
 0x425   : > { %v1372_v11 = vadd.f32 %v1613_v60, %v1371_v9 }
 0x427   : > { %v1376_v16 = vsel %vm1375_vm6, %v1613_v60, %v1372_v11 }
 0x428   : > { %v1381_v19 = vsel %vm1378_vm8, %v1380_v15, %v1376_v16 }
 0x429   : > { %v1387_v20 = vrot.slane %v1381_v19, 6 }
 0x42b   : > { %v1391_v22 = vsel %vm1390_vm9, %v1389_v21, %v1387_v20 }
 0x42c   : > { %1397 = vst.msk [vmem:[%s502_s16] sm:$0x7] %vm1395_vm10, %v1391_v22 }
 0x42d PF: > { %s19_s11 = sadd.s32 1, %s1636_s11   ;;  %s1999_s30 = smov %s1632_s10 }
 0x42e   : > { %p16_p5 = scmp.ge.s32.totalorder %s19_s11, 4   ;;  %s2000_s10 = smov %s2002_s12 }
 0x430   :  { %18 = sbr.rel (!%p16_p5) target bundleno = 2 (0x2), region = 120 }

</bundles_post_ra>
